<compile_context>
chip_gen: v6e
topology: v6e:2x2x1
jax: 0.10.0
libtpu: 0.0.40
codegen_flags: <defaults>
</compile_context>

<pallas_src>
import functools
from typing import NamedTuple

import jax
import jax.numpy as jnp
from jax.experimental import pallas as pl
from jax.experimental.pallas import tpu as pltpu

EPS = 1e-10
NEG_BIG = -1e30  # finite stand-in for -inf so masked logits never produce NaN


def _round_up(v, m):
    return (v + m - 1) // m * m


class Set2SetParams(NamedTuple):
    w: jax.Array          # (2*ZP, 4*GP) bf16, lane/sublane-padded packed weight
    b: jax.Array          # (1, 4*GP) f32 packed bias
    input_dim: int
    gate_pitch: int
    slot_pitch: int


def pack_set2set_params(input_dim, w_ih, w_hh, b_ih, b_hh):
    """One-time packing of the LSTM weights (hoisted out of the per-call path).

    Since the Set2Set query equals the LSTM hidden state h, the W_ih "query"
    half and W_hh act on the same vector and are merged.  Gate columns are
    padded to a 128-lane pitch so each gate slice is lane-tile aligned.
    """
    D = input_dim
    GP = _round_up(D, 128)   # gate column pitch
    ZP = _round_up(D, 128)   # input slot row pitch
    w_ih = jnp.asarray(w_ih, jnp.float32)                  # (4D, 2D), gates i,f,g,o
    w_hh = jnp.asarray(w_hh, jnp.float32)                  # (4D, D)
    b = jnp.asarray(b_ih, jnp.float32) + jnp.asarray(b_hh, jnp.float32)  # (4D,)

    w_q = w_ih[:, :D].T + w_hh.T                           # (D, 4D) acts on h
    w_r = w_ih[:, D:].T                                    # (D, 4D) acts on readout
    w_packed = jnp.zeros((2 * ZP, 4 * GP), jnp.float32)
    b_packed = jnp.zeros((1, 4 * GP), jnp.float32)
    for g in range(4):
        w_packed = w_packed.at[0:D, g * GP:g * GP + D].set(w_q[:, g * D:(g + 1) * D])
        w_packed = w_packed.at[ZP:ZP + D, g * GP:g * GP + D].set(w_r[:, g * D:(g + 1) * D])
        b_packed = b_packed.at[0, g * GP:g * GP + D].set(b[g * D:(g + 1) * D])
    return Set2SetParams(w=w_packed.astype(jnp.bfloat16), b=b_packed,
                         input_dim=D, gate_pitch=GP, slot_pitch=ZP)


def _set2set_kernel(n2g_ref, x_ref, xt_ref, w_ref, b_ref,
                    q_out_ref, r_out_ref,
                    h_ref, c_ref, z_ref, m_ref, l_ref, acc_ref,
                    *, input_dim, num_step, n_tiles, gate_pitch, slot_pitch):
    D = input_dim
    GP = gate_pitch
    ZP = slot_pitch
    B = q_out_ref.shape[0]
    tile_n = x_ref.shape[0]

    step = pl.program_id(0)   # Set2Set process step (outer, sequential)
    nt = pl.program_id(1)     # node tile (inner reduction axis)

    # ---------------- per-step init + fused LSTM cell (node tile 0) ----------
    @pl.when(nt == 0)
    def _lstm_and_init():
        @pl.when(step == 0)
        def _zero_state():
            z_ref[...] = jnp.zeros(z_ref.shape, z_ref.dtype)
            c_ref[...] = jnp.zeros(c_ref.shape, c_ref.dtype)

        # One fused MXU matmul per step: z = [h | readout] in lane-aligned slots.
        gates = jnp.dot(z_ref[...].astype(jnp.bfloat16), w_ref[...],
                        preferred_element_type=jnp.float32) + b_ref[...]
        i_g = jax.nn.sigmoid(gates[:, 0 * GP:0 * GP + D])
        f_g = jax.nn.sigmoid(gates[:, 1 * GP:1 * GP + D])
        g_g = jnp.tanh(gates[:, 2 * GP:2 * GP + D])
        o_g = jax.nn.sigmoid(gates[:, 3 * GP:3 * GP + D])
        c_new = f_g * c_ref[...] + i_g * g_g
        h_new = o_g * jnp.tanh(c_new)          # query == LSTM output == h
        c_ref[...] = c_new
        h_ref[...] = h_new

        # reset the online-softmax state for this step
        m_ref[...] = jnp.full(m_ref.shape, NEG_BIG, m_ref.dtype)
        l_ref[...] = jnp.zeros(l_ref.shape, l_ref.dtype)
        acc_ref[...] = jnp.zeros(acc_ref.shape, acc_ref.dtype)

    # ------------- online (flash-style) masked softmax over this tile --------
    h = h_ref[...]                                                # (B, D) f32
    # scores = h @ x_tile^T ; x^T is pre-transposed in the wrapper (no XLU op)
    scores = jnp.dot(h.astype(jnp.bfloat16), xt_ref[...],
                     preferred_element_type=jnp.float32)          # (B, TILE_N)

    gid = jax.lax.broadcasted_iota(jnp.int32, (B, tile_n), 0)
    member = n2g_ref[...] == gid                                  # (B, TILE_N)

    masked = jnp.where(member, scores, NEG_BIG)
    m_prev = m_ref[...]
    m_new = jnp.maximum(m_prev, jnp.max(masked, axis=1, keepdims=True))
    alpha = jnp.exp(m_prev - m_new)                               # (B, 1)
    ex = jnp.where(member, jnp.exp(scores - m_new), 0.0)          # (B, TILE_N)
    l_ref[...] = alpha * l_ref[...] + jnp.sum(ex, axis=1, keepdims=True)
    acc_ref[...] = alpha * acc_ref[...] + jnp.dot(
        ex.astype(jnp.bfloat16), x_ref[...], preferred_element_type=jnp.float32)
    m_ref[...] = m_new

    # ---------------- per-step finalize (last node tile) ---------------------
    @pl.when(nt == n_tiles - 1)
    def _finalize():
        readout = acc_ref[...] * pl.reciprocal(l_ref[...] + EPS, approx=True)
        # stage next step's fused LSTM input [h | readout] in aligned slots
        z_ref[:, 0:D] = h_ref[...]
        z_ref[:, ZP:ZP + D] = readout

        @pl.when(step == num_step - 1)
        def _write_out():
            q_out_ref[...] = h_ref[...]
            r_out_ref[...] = readout


def _vmem_cap_bytes():
    try:
        return int(pltpu.get_tpu_info().vmem_capacity_bytes)
    except Exception:
        return 64 << 20   # conservative (v7x-per-TC) fallback


def set2set_pallas(x, node2graph, batch_size, params: Set2SetParams, num_step=3):
    """x: (N, D) node features, node2graph: (N,) int graph ids."""
    N, D = x.shape
    assert D == params.input_dim
    B = batch_size
    GP, ZP = params.gate_pitch, params.slot_pitch

    # Node-axis tiling: multi-tile case needs TILE_N % 128 == 0 (lane dim of
    # x^T / node2graph blocks); single-tile case only needs sublane alignment.
    TILE_N_MAX = 512
    if N <= TILE_N_MAX:
        tile_n = _round_up(max(N, 8), 8)
    else:
        tile_n = TILE_N_MAX
    n_pad = _round_up(N, tile_n)
    n_tiles = n_pad // tile_n

    x_bf16 = jnp.pad(jnp.asarray(x, jnp.float32), ((0, n_pad - N), (0, 0))
                     ).astype(jnp.bfloat16)                       # (N_pad, D)
    xt_bf16 = x_bf16.T                                            # (D, N_pad), hoisted transpose
    n2g = jnp.pad(jnp.asarray(node2graph, jnp.int32), (0, n_pad - N),
                  constant_values=-1).reshape(1, n_pad)

    kernel = functools.partial(
        _set2set_kernel, input_dim=D, num_step=num_step, n_tiles=n_tiles,
        gate_pitch=GP, slot_pitch=ZP)

    grid_spec = pltpu.PrefetchScalarGridSpec(
        num_scalar_prefetch=0,
        grid=(num_step, n_tiles),          # step outer, node (reduction) last
        in_specs=[
            pl.BlockSpec((1, tile_n), lambda s, n: (0, n)),       # node2graph
            pl.BlockSpec((tile_n, D), lambda s, n: (n, 0)),       # x (readout matmul RHS)
            pl.BlockSpec((D, tile_n), lambda s, n: (0, n)),       # x^T (scores matmul RHS)
            pl.BlockSpec((2 * ZP, 4 * GP), lambda s, n: (0, 0)),  # packed LSTM weight
            pl.BlockSpec((1, 4 * GP), lambda s, n: (0, 0)),       # packed bias
        ],
        out_specs=[
            pl.BlockSpec((B, D), lambda s, n: (0, 0)),            # query (h)
            pl.BlockSpec((B, D), lambda s, n: (0, 0)),            # readout
        ],
        scratch_shapes=[
            pltpu.VMEM((B, D), jnp.float32),        # h
            pltpu.VMEM((B, D), jnp.float32),        # c
            pltpu.VMEM((B, 2 * ZP), jnp.float32),   # z = [h | readout] slots
            pltpu.VMEM((B, 1), jnp.float32),        # running max
            pltpu.VMEM((B, 1), jnp.float32),        # running sum
            pltpu.VMEM((B, D), jnp.float32),        # readout accumulator
        ],
    )

    # Right-size the VMEM limit from the actual footprint and chip capacity.
    footprint = (
        2 * (tile_n * D * 2)           # x tiles (double-buffered, bf16)
        + 2 * (D * tile_n * 2)         # x^T tiles
        + 2 * (tile_n * 4)             # node2graph tiles
        + (2 * ZP) * (4 * GP) * 2      # packed weight (bf16, resident)
        + (4 * GP) * 4                 # bias
        + B * (2 * ZP) * 4             # z scratch
        + 3 * B * D * 4 + 2 * B * 4    # h, c, acc, m, l
        + 2 * B * D * 4                # resident outputs
    )
    cap = _vmem_cap_bytes()
    vmem_limit = int(min(cap * 3 // 4, max(4 * footprint, 16 << 20)))

    cost = pl.CostEstimate(
        flops=int(num_step * (2 * B * (2 * ZP) * (4 * GP) + 4 * B * n_pad * D)),
        transcendentals=int(num_step * (B * n_pad + 5 * B * D)),
        bytes_accessed=int(num_step * (2 * n_pad * D * 2 + n_pad * 4)
                           + (2 * ZP) * (4 * GP) * 2 + (4 * GP) * 4
                           + 2 * B * D * 4),
    )

    # Note: x / x^T BlockSpecs rely on the default 2-deep pipelining
    # (== pl.Buffered(2)); raise to 3 only if the x DMA is still exposed.
    query, readout = pl.pallas_call(
        kernel,
        out_shape=(jax.ShapeDtypeStruct((B, D), jnp.float32),
                   jax.ShapeDtypeStruct((B, D), jnp.float32)),
        grid_spec=grid_spec,
        compiler_params=pltpu.CompilerParams(
            dimension_semantics=("arbitrary", "arbitrary"),
            vmem_limit_bytes=vmem_limit),
        cost_estimate=cost,
    )(n2g, x_bf16, xt_bf16, params.w, params.b)

    return jnp.concatenate([query, readout], axis=-1)


def set2set_reference(x, node2graph, batch_size, w_ih, w_hh, b_ih, b_hh,
                      num_step=3):
    """Pure-JAX reference mirroring the PyTorch module (f32 throughout)."""
    N, D = x.shape
    B = batch_size
    h = jnp.zeros((B, D), jnp.float32)
    c = jnp.zeros((B, D), jnp.float32)
    q_star = jnp.zeros((B, 2 * D), jnp.float32)
    for _ in range(num_step):
        gates = q_star @ w_ih.T + b_ih + h @ w_hh.T + b_hh
        i_g = jax.nn.sigmoid(gates[:, 0:D])
        f_g = jax.nn.sigmoid(gates[:, D:2 * D])
        g_g = jnp.tanh(gates[:, 2 * D:3 * D])
        o_g = jax.nn.sigmoid(gates[:, 3 * D:4 * D])
        c = f_g * c + i_g * g_g
        h = o_g * jnp.tanh(c)
        query = h
        product = jnp.sum(query[node2graph] * x, axis=-1)
        mx = jax.ops.segment_max(product, node2graph, num_segments=B)
        ex = jnp.exp(product - mx[node2graph])
        nz = jax.ops.segment_sum(ex, node2graph, num_segments=B)
        att = ex / (nz[node2graph] + EPS)
        out = jax.ops.segment_sum(att[:, None] * x, node2graph, num_segments=B)
        q_star = jnp.concatenate([query, out], axis=-1)
    return q_star


if __name__ == "__main__":
    key = jax.random.PRNGKey(0)
    N, D, B, NUM_STEP = 16, 32, 2, 3

    k_x, k_wih, k_whh, k_bih, k_bhh = jax.random.split(key, 5)
    x = jax.random.normal(k_x, (N, D), jnp.float32)
    # first 9 nodes -> graph 0, remaining 7 -> graph 1
    node2graph = jnp.array([0] * 9 + [1] * 7, dtype=jnp.int32)

    # torch.nn.LSTM-style init: U(-1/sqrt(hidden), 1/sqrt(hidden))
    bound = 1.0 / jnp.sqrt(jnp.float32(D))
    w_ih = jax.random.uniform(k_wih, (4 * D, 2 * D), jnp.float32, -bound, bound)
    w_hh = jax.random.uniform(k_whh, (4 * D, D), jnp.float32, -bound, bound)
    b_ih = jax.random.uniform(k_bih, (4 * D,), jnp.float32, -bound, bound)
    b_hh = jax.random.uniform(k_bhh, (4 * D,), jnp.float32, -bound, bound)

    params = pack_set2set_params(D, w_ih, w_hh, b_ih, b_hh)   # one-time packing
    out = set2set_pallas(x, node2graph, B, params, NUM_STEP)
    out = jax.block_until_ready(out)

    ref = set2set_reference(x, node2graph, B, w_ih, w_hh, b_ih, b_hh, NUM_STEP)
    assert out.shape == (B, 2 * D)
    # tolerance accounts for bf16 MXU operands + the EUP approximate reciprocal
    assert jnp.allclose(out, ref, atol=2e-2, rtol=2e-2), (
        f"mismatch: max abs err {jnp.max(jnp.abs(out - ref))}")

    print("KERNEL_OK")
</pallas_src>

<mosaic_0001>
module attributes {stable_mosaic.version = 11 : i64} {
  func.func @_set2set_kernel(%arg0: i32, %arg1: i32, %arg2: memref<1x16xi32, #tpu.memory_space<vmem>>, %arg3: memref<16x32xbf16, #tpu.memory_space<vmem>>, %arg4: memref<32x16xbf16, #tpu.memory_space<vmem>>, %arg5: memref<256x512xbf16, #tpu.memory_space<vmem>>, %arg6: memref<1x512xf32, #tpu.memory_space<vmem>>, %arg7: memref<2x32xf32, #tpu.memory_space<vmem>>, %arg8: memref<2x32xf32, #tpu.memory_space<vmem>>, %arg9: memref<2x32xf32, #tpu.memory_space<vmem>>, %arg10: memref<2x32xf32, #tpu.memory_space<vmem>>, %arg11: memref<2x256xf32, #tpu.memory_space<vmem>>, %arg12: memref<2x1xf32, #tpu.memory_space<vmem>>, %arg13: memref<2x1xf32, #tpu.memory_space<vmem>>, %arg14: memref<2x32xf32, #tpu.memory_space<vmem>>) attributes {dimension_semantics = [#tpu.dimension_semantics<arbitrary>, #tpu.dimension_semantics<arbitrary>], iteration_bounds = array<i64: 3, 1>, scalar_prefetch = 0 : i64, scratch_operands = 6 : i64, tpu.core_type = #tpu.core_type<tc>, window_params = [{transform_indices = @transform_0, window_bounds = array<i64: 1, 16>}, {transform_indices = @transform_1, window_bounds = array<i64: 16, 32>}, {transform_indices = @transform_2, window_bounds = array<i64: 32, 16>}, {pipeline_mode = #tpu.pipeline_mode<synchronous>, transform_indices = @transform_3, window_bounds = array<i64: 256, 512>}, {pipeline_mode = #tpu.pipeline_mode<synchronous>, transform_indices = @transform_4, window_bounds = array<i64: 1, 512>}, {pipeline_mode = #tpu.pipeline_mode<synchronous>, transform_indices = @transform_5, window_bounds = array<i64: 2, 32>}, {pipeline_mode = #tpu.pipeline_mode<synchronous>, transform_indices = @transform_6, window_bounds = array<i64: 2, 32>}]} {
    %c0_i32 = arith.constant 0 : i32
    %0 = arith.cmpi eq, %arg1, %c0_i32 : i32
    %1 = arith.extui %0 : i1 to i32
    %c0_i32_0 = arith.constant 0 : i32
    %2 = arith.cmpi ne, %1, %c0_i32_0 : i32
    scf.if %2 {
      %c0_i32_27 = arith.constant 0 : i32
      %42 = arith.cmpi eq, %arg0, %c0_i32_27 : i32
      %43 = arith.extui %42 : i1 to i32
      %c0_i32_28 = arith.constant 0 : i32
      %44 = arith.cmpi ne, %43, %c0_i32_28 : i32
      scf.if %44 {
        %cst_54 = arith.constant 0.000000e+00 : f32
        %86 = vector.broadcast %cst_54 : f32 to vector<2x256xf32>
        %c0_55 = arith.constant 0 : index
        %c0_56 = arith.constant 0 : index
        %87 = vector.load %arg11[%c0_55, %c0_56] : memref<2x256xf32, #tpu.memory_space<vmem>>, vector<2x256xf32>
        tpu.vector_store %arg11[%c0_55, %c0_56], %86 {strides = array<i32>} : memref<2x256xf32, #tpu.memory_space<vmem>>, vector<2x256xf32>,
        %cst_57 = arith.constant 0.000000e+00 : f32
        %88 = vector.broadcast %cst_57 : f32 to vector<2x32xf32>
        %c0_58 = arith.constant 0 : index
        %c0_59 = arith.constant 0 : index
        %89 = vector.load %arg10[%c0_58, %c0_59] : memref<2x32xf32, #tpu.memory_space<vmem>>, vector<2x32xf32>
        tpu.vector_store %arg10[%c0_58, %c0_59], %88 {strides = array<i32>} : memref<2x32xf32, #tpu.memory_space<vmem>>, vector<2x32xf32>,
      } else {
      }
      %c0_29 = arith.constant 0 : index
      %c0_30 = arith.constant 0 : index
      %45 = vector.load %arg11[%c0_29, %c0_30] : memref<2x256xf32, #tpu.memory_space<vmem>>, vector<2x256xf32>
      %46 = arith.truncf %45 : vector<2x256xf32> to vector<2x256xbf16>
      %c0_31 = arith.constant 0 : index
      %c0_32 = arith.constant 0 : index
      %47 = vector.load %arg5[%c0_31, %c0_32] : memref<256x512xbf16, #tpu.memory_space<vmem>>, vector<256x512xbf16>
      %cst_33 = arith.constant dense<0.000000e+00> : vector<2x512xf32>
      %48 = tpu.matmul %46, %47, %cst_33 {dimension_numbers = #tpu.dot_dimension_numbers<[1], [0], [0], [1], [0, 0, 1, 1], [], []>} : vector<2x256xbf16>, vector<256x512xbf16>, vector<2x512xf32> -> vector<2x512xf32>
      %c0_34 = arith.constant 0 : index
      %c0_35 = arith.constant 0 : index
      %49 = vector.load %arg6[%c0_34, %c0_35] : memref<1x512xf32, #tpu.memory_space<vmem>>, vector<1x512xf32>
      %50 = vector.broadcast %49 : vector<1x512xf32> to vector<2x512xf32>
      %51 = arith.addf %48, %50 : vector<2x512xf32>
      %52 = vector.extract_strided_slice %51 {offsets = [0, 0], sizes = [2, 32], strides = [1, 1]} : vector<2x512xf32> to vector<2x32xf32>
      %53 = arith.negf %52 : vector<2x32xf32>
      %54 = math.exp %53 : vector<2x32xf32>
      %cst_36 = arith.constant 1.000000e+00 : f32
      %55 = vector.broadcast %cst_36 : f32 to vector<2x32xf32>
      %56 = arith.addf %55, %54 : vector<2x32xf32>
      %57 = arith.divf %55, %56 : vector<2x32xf32>
      %58 = vector.extract_strided_slice %51 {offsets = [0, 128], sizes = [2, 32], strides = [1, 1]} : vector<2x512xf32> to vector<2x32xf32>
      %59 = arith.negf %58 : vector<2x32xf32>
      %60 = math.exp %59 : vector<2x32xf32>
      %cst_37 = arith.constant 1.000000e+00 : f32
      %61 = vector.broadcast %cst_37 : f32 to vector<2x32xf32>
      %62 = arith.addf %61, %60 : vector<2x32xf32>
      %63 = arith.divf %61, %62 : vector<2x32xf32>
      %64 = vector.extract_strided_slice %51 {offsets = [0, 256], sizes = [2, 32], strides = [1, 1]} : vector<2x512xf32> to vector<2x32xf32>
      %65 = math.tanh %64 : vector<2x32xf32>
      %66 = vector.extract_strided_slice %51 {offsets = [0, 384], sizes = [2, 32], strides = [1, 1]} : vector<2x512xf32> to vector<2x32xf32>
      %67 = arith.negf %66 : vector<2x32xf32>
      %68 = math.exp %67 : vector<2x32xf32>
      %cst_38 = arith.constant 1.000000e+00 : f32
      %69 = vector.broadcast %cst_38 : f32 to vector<2x32xf32>
      %70 = arith.addf %69, %68 : vector<2x32xf32>
      %71 = arith.divf %69, %70 : vector<2x32xf32>
      %c0_39 = arith.constant 0 : index
      %c0_40 = arith.constant 0 : index
      %72 = vector.load %arg10[%c0_39, %c0_40] : memref<2x32xf32, #tpu.memory_space<vmem>>, vector<2x32xf32>
      %73 = arith.mulf %63, %72 : vector<2x32xf32>
      %74 = arith.mulf %57, %65 : vector<2x32xf32>
      %75 = arith.addf %73, %74 : vector<2x32xf32>
      %76 = math.tanh %75 : vector<2x32xf32>
      %77 = arith.mulf %71, %76 : vector<2x32xf32>
      %c0_41 = arith.constant 0 : index
      %c0_42 = arith.constant 0 : index
      %78 = vector.load %arg10[%c0_41, %c0_42] : memref<2x32xf32, #tpu.memory_space<vmem>>, vector<2x32xf32>
      tpu.vector_store %arg10[%c0_41, %c0_42], %75 {strides = array<i32>} : memref<2x32xf32, #tpu.memory_space<vmem>>, vector<2x32xf32>,
      %c0_43 = arith.constant 0 : index
      %c0_44 = arith.constant 0 : index
      %79 = vector.load %arg9[%c0_43, %c0_44] : memref<2x32xf32, #tpu.memory_space<vmem>>, vector<2x32xf32>
      tpu.vector_store %arg9[%c0_43, %c0_44], %77 {strides = array<i32>} : memref<2x32xf32, #tpu.memory_space<vmem>>, vector<2x32xf32>,
      %cst_45 = arith.constant -1.000000e+30 : f32
      %80 = vector.broadcast %cst_45 : f32 to vector<2x1xf32>
      %c0_46 = arith.constant 0 : index
      %c0_47 = arith.constant 0 : index
      %81 = vector.load %arg12[%c0_46, %c0_47] : memref<2x1xf32, #tpu.memory_space<vmem>>, vector<2x1xf32>
      tpu.vector_store %arg12[%c0_46, %c0_47], %80 {strides = array<i32>} : memref<2x1xf32, #tpu.memory_space<vmem>>, vector<2x1xf32>,
      %cst_48 = arith.constant 0.000000e+00 : f32
      %82 = vector.broadcast %cst_48 : f32 to vector<2x1xf32>
      %c0_49 = arith.constant 0 : index
      %c0_50 = arith.constant 0 : index
      %83 = vector.load %arg13[%c0_49, %c0_50] : memref<2x1xf32, #tpu.memory_space<vmem>>, vector<2x1xf32>
      tpu.vector_store %arg13[%c0_49, %c0_50], %82 {strides = array<i32>} : memref<2x1xf32, #tpu.memory_space<vmem>>, vector<2x1xf32>,
      %cst_51 = arith.constant 0.000000e+00 : f32
      %84 = vector.broadcast %cst_51 : f32 to vector<2x32xf32>
      %c0_52 = arith.constant 0 : index
      %c0_53 = arith.constant 0 : index
      %85 = vector.load %arg14[%c0_52, %c0_53] : memref<2x32xf32, #tpu.memory_space<vmem>>, vector<2x32xf32>
      tpu.vector_store %arg14[%c0_52, %c0_53], %84 {strides = array<i32>} : memref<2x32xf32, #tpu.memory_space<vmem>>, vector<2x32xf32>,
    } else {
    }
    %c0 = arith.constant 0 : index
    %c0_1 = arith.constant 0 : index
    %3 = vector.load %arg9[%c0, %c0_1] : memref<2x32xf32, #tpu.memory_space<vmem>>, vector<2x32xf32>
    %4 = arith.truncf %3 : vector<2x32xf32> to vector<2x32xbf16>
    %c0_2 = arith.constant 0 : index
    %c0_3 = arith.constant 0 : index
    %5 = vector.load %arg4[%c0_2, %c0_3] : memref<32x16xbf16, #tpu.memory_space<vmem>>, vector<32x16xbf16>
    %cst = arith.constant dense<0.000000e+00> : vector<2x16xf32>
    %6 = tpu.matmul %4, %5, %cst {dimension_numbers = #tpu.dot_dimension_numbers<[1], [0], [0], [1], [0, 0, 1, 1], [], []>} : vector<2x32xbf16>, vector<32x16xbf16>, vector<2x16xf32> -> vector<2x16xf32>
    %7 = tpu.iota {dimensions = array<i32: 0>} : vector<2x16xi32>
    %c0_4 = arith.constant 0 : index
    %c0_5 = arith.constant 0 : index
    %8 = vector.load %arg2[%c0_4, %c0_5] : memref<1x16xi32, #tpu.memory_space<vmem>>, vector<1x16xi32>
    %9 = vector.broadcast %8 : vector<1x16xi32> to vector<2x16xi32>
    %10 = arith.cmpi eq, %9, %7 : vector<2x16xi32>
    %cst_6 = arith.constant -1.000000e+30 : f32
    %11 = vector.broadcast %cst_6 : f32 to vector<2x16xf32>
    %12 = arith.select %10, %6, %11 : vector<2x16xi1>, vector<2x16xf32>
    %c0_7 = arith.constant 0 : index
    %c0_8 = arith.constant 0 : index
    %13 = vector.load %arg12[%c0_7, %c0_8] : memref<2x1xf32, #tpu.memory_space<vmem>>, vector<2x1xf32>
    %cst_9 = arith.constant dense<0xFF800000> : vector<2xf32>
    %14 = vector.multi_reduction <maximumf>, %12, %cst_9 [1] : vector<2x16xf32> to vector<2xf32>
    %15 = vector.shape_cast %14 : vector<2xf32> to vector<2x1xf32>
    %16 = arith.maximumf %13, %15 : vector<2x1xf32>
    %17 = arith.subf %13, %16 : vector<2x1xf32>
    %18 = math.exp %17 : vector<2x1xf32>
    %19 = vector.broadcast %16 : vector<2x1xf32> to vector<2x16xf32>
    %20 = arith.subf %6, %19 : vector<2x16xf32>
    %21 = math.exp %20 : vector<2x16xf32>
    %cst_10 = arith.constant 0.000000e+00 : f32
    %22 = vector.broadcast %cst_10 : f32 to vector<2x16xf32>
    %23 = arith.select %10, %21, %22 : vector<2x16xi1>, vector<2x16xf32>
    %c0_11 = arith.constant 0 : index
    %c0_12 = arith.constant 0 : index
    %24 = vector.load %arg13[%c0_11, %c0_12] : memref<2x1xf32, #tpu.memory_space<vmem>>, vector<2x1xf32>
    %25 = arith.mulf %18, %24 : vector<2x1xf32>
    %cst_13 = arith.constant dense<0.000000e+00> : vector<2xf32>
    %26 = vector.multi_reduction <add>, %23, %cst_13 [1] : vector<2x16xf32> to vector<2xf32>
    %27 = vector.shape_cast %26 : vector<2xf32> to vector<2x1xf32>
    %28 = arith.addf %25, %27 : vector<2x1xf32>
    %c0_14 = arith.constant 0 : index
    %c0_15 = arith.constant 0 : index
    %29 = vector.load %arg13[%c0_14, %c0_15] : memref<2x1xf32, #tpu.memory_space<vmem>>, vector<2x1xf32>
    tpu.vector_store %arg13[%c0_14, %c0_15], %28 {strides = array<i32>} : memref<2x1xf32, #tpu.memory_space<vmem>>, vector<2x1xf32>,
    %c0_16 = arith.constant 0 : index
    %c0_17 = arith.constant 0 : index
    %30 = vector.load %arg14[%c0_16, %c0_17] : memref<2x32xf32, #tpu.memory_space<vmem>>, vector<2x32xf32>
    %31 = vector.broadcast %18 : vector<2x1xf32> to vector<2x32xf32>
    %32 = arith.mulf %31, %30 : vector<2x32xf32>
    %33 = arith.truncf %23 : vector<2x16xf32> to vector<2x16xbf16>
    %c0_18 = arith.constant 0 : index
    %c0_19 = arith.constant 0 : index
    %34 = vector.load %arg3[%c0_18, %c0_19] : memref<16x32xbf16, #tpu.memory_space<vmem>>, vector<16x32xbf16>
    %cst_20 = arith.constant dense<0.000000e+00> : vector<2x32xf32>
    %35 = tpu.matmul %33, %34, %cst_20 {dimension_numbers = #tpu.dot_dimension_numbers<[1], [0], [0], [1], [0, 0, 1, 1], [], []>} : vector<2x16xbf16>, vector<16x32xbf16>, vector<2x32xf32> -> vector<2x32xf32>
    %36 = arith.addf %32, %35 : vector<2x32xf32>
    %c0_21 = arith.constant 0 : index
    %c0_22 = arith.constant 0 : index
    %37 = vector.load %arg14[%c0_21, %c0_22] : memref<2x32xf32, #tpu.memory_space<vmem>>, vector<2x32xf32>
    tpu.vector_store %arg14[%c0_21, %c0_22], %36 {strides = array<i32>} : memref<2x32xf32, #tpu.memory_space<vmem>>, vector<2x32xf32>,
    %c0_23 = arith.constant 0 : index
    %c0_24 = arith.constant 0 : index
    %38 = vector.load %arg12[%c0_23, %c0_24] : memref<2x1xf32, #tpu.memory_space<vmem>>, vector<2x1xf32>
    tpu.vector_store %arg12[%c0_23, %c0_24], %16 {strides = array<i32>} : memref<2x1xf32, #tpu.memory_space<vmem>>, vector<2x1xf32>,
    %c0_i32_25 = arith.constant 0 : i32
    %39 = arith.cmpi eq, %arg1, %c0_i32_25 : i32
    %40 = arith.extui %39 : i1 to i32
    %c0_i32_26 = arith.constant 0 : i32
    %41 = arith.cmpi ne, %40, %c0_i32_26 : i32
    scf.if %41 {
      %c0_27 = arith.constant 0 : index
      %c0_28 = arith.constant 0 : index
      %42 = vector.load %arg14[%c0_27, %c0_28] : memref<2x32xf32, #tpu.memory_space<vmem>>, vector<2x32xf32>
      %c0_29 = arith.constant 0 : index
      %c0_30 = arith.constant 0 : index
      %43 = vector.load %arg13[%c0_29, %c0_30] : memref<2x1xf32, #tpu.memory_space<vmem>>, vector<2x1xf32>
      %cst_31 = arith.constant 1.000000e-10 : f32
      %44 = vector.broadcast %cst_31 : f32 to vector<2x1xf32>
      %45 = arith.addf %43, %44 : vector<2x1xf32>
      %46 = tpu.reciprocal %45 {approx = true} : vector<2x1xf32> -> vector<2x1xf32>
      %47 = vector.broadcast %46 : vector<2x1xf32> to vector<2x32xf32>
      %48 = arith.mulf %42, %47 : vector<2x32xf32>
      %c0_32 = arith.constant 0 : index
      %c0_33 = arith.constant 0 : index
      %49 = vector.load %arg9[%c0_32, %c0_33] : memref<2x32xf32, #tpu.memory_space<vmem>>, vector<2x32xf32>
      %c0_34 = arith.constant 0 : index
      %c0_35 = arith.constant 0 : index
      %50 = vector.load %arg11[%c0_34, %c0_35] : memref<2x256xf32, #tpu.memory_space<vmem>>, vector<2x32xf32>
      tpu.vector_store %arg11[%c0_34, %c0_35], %49 {strides = array<i32>} : memref<2x256xf32, #tpu.memory_space<vmem>>, vector<2x32xf32>,
      %c0_36 = arith.constant 0 : index
      %c128 = arith.constant 128 : index
      %51 = vector.load %arg11[%c0_36, %c128] : memref<2x256xf32, #tpu.memory_space<vmem>>, vector<2x32xf32>
      tpu.vector_store %arg11[%c0_36, %c128], %48 {strides = array<i32>} : memref<2x256xf32, #tpu.memory_space<vmem>>, vector<2x32xf32>,
      %c2_i32 = arith.constant 2 : i32
      %52 = arith.cmpi eq, %arg0, %c2_i32 : i32
      %53 = arith.extui %52 : i1 to i32
      %c0_i32_37 = arith.constant 0 : i32
      %54 = arith.cmpi ne, %53, %c0_i32_37 : i32
      scf.if %54 {
        %c0_38 = arith.constant 0 : index
        %c0_39 = arith.constant 0 : index
        %55 = vector.load %arg9[%c0_38, %c0_39] : memref<2x32xf32, #tpu.memory_space<vmem>>, vector<2x32xf32>
        %c0_40 = arith.constant 0 : index
        %c0_41 = arith.constant 0 : index
        %56 = vector.load %arg7[%c0_40, %c0_41] : memref<2x32xf32, #tpu.memory_space<vmem>>, vector<2x32xf32>
        tpu.vector_store %arg7[%c0_40, %c0_41], %55 {strides = array<i32>} : memref<2x32xf32, #tpu.memory_space<vmem>>, vector<2x32xf32>,
        %c0_42 = arith.constant 0 : index
        %c0_43 = arith.constant 0 : index
        %57 = vector.load %arg8[%c0_42, %c0_43] : memref<2x32xf32, #tpu.memory_space<vmem>>, vector<2x32xf32>
        tpu.vector_store %arg8[%c0_42, %c0_43], %48 {strides = array<i32>} : memref<2x32xf32, #tpu.memory_space<vmem>>, vector<2x32xf32>,
      } else {
      }
    } else {
    }
    return
  }
  func.func @transform_0(%arg0: i32, %arg1: i32) -> (i32, i32) {
    %c0_i32 = arith.constant 0 : i32
    %c0_i32_0 = arith.constant 0 : i32
    return %c0_i32, %arg1 : i32, i32
  }
  func.func @transform_1(%arg0: i32, %arg1: i32) -> (i32, i32) {
    %c0_i32 = arith.constant 0 : i32
    %c0_i32_0 = arith.constant 0 : i32
    return %arg1, %c0_i32 : i32, i32
  }
  func.func @transform_2(%arg0: i32, %arg1: i32) -> (i32, i32) {
    %c0_i32 = arith.constant 0 : i32
    %c0_i32_0 = arith.constant 0 : i32
    return %c0_i32, %arg1 : i32, i32
  }
  func.func @transform_3(%arg0: i32, %arg1: i32) -> (i32, i32) {
    %c0_i32 = arith.constant 0 : i32
    %c0_i32_0 = arith.constant 0 : i32
    %c0_i32_1 = arith.constant 0 : i32
    return %c0_i32, %c0_i32_0 : i32, i32
  }
  func.func @transform_4(%arg0: i32, %arg1: i32) -> (i32, i32) {
    %c0_i32 = arith.constant 0 : i32
    %c0_i32_0 = arith.constant 0 : i32
    %c0_i32_1 = arith.constant 0 : i32
    return %c0_i32, %c0_i32_0 : i32, i32
  }
  func.func @transform_5(%arg0: i32, %arg1: i32) -> (i32, i32) {
    %c0_i32 = arith.constant 0 : i32
    %c0_i32_0 = arith.constant 0 : i32
    %c0_i32_1 = arith.constant 0 : i32
    return %c0_i32, %c0_i32_0 : i32, i32
  }
  func.func @transform_6(%arg0: i32, %arg1: i32) -> (i32, i32) {
    %c0_i32 = arith.constant 0 : i32
    %c0_i32_0 = arith.constant 0 : i32
    %c0_i32_1 = arith.constant 0 : i32
    return %c0_i32, %c0_i32_0 : i32, i32
  }
}

</mosaic_0001>

<bundles_post_ra>
// kernel: tpu_custom_call.1
= control target key start
LH: loop header
LB: loop body
LE: loop exit
PB: predicated region body
PF: predicated region fallthrough
CT: control target
= control target key end

     0   :  { %12 = vsyncpa [#allocation9], 0  ;;  %s1719_s0 = inlined_call_operand.vmem [shape: s32[1,16], index: 0, kind: input, shape index: {}]   ;;  %s1720_s1 = inlined_call_operand.vmem [shape: bf16[16,32], index: 1, kind: input, shape index: {}]   ;;  %s1721_s2 = inlined_call_operand.vmem [shape: bf16[32,16], index: 2, kind: input, shape index: {}]   ;;  %s1722_s3 = inlined_call_operand.hbm [shape: bf16[256,512], index: 3, kind: input, shape index: {}]   ;;  %s1723_s4 = inlined_call_operand.vmem [shape: f32[1,512], index: 4, kind: input, shape index: {}]   ;;  %s1724_s5 = inlined_call_operand.hbm [shape: f32[2,32], index: 5, kind: output, shape index: {0}]   ;;  %s1725_s6 = inlined_call_operand.hbm [shape: f32[2,32], index: 6, kind: output, shape index: {1}]  }
   0x1   :  { %13 = vsyncpa [#allocation10], 0 }
   0x2   :  { %14 = vsyncpa [#allocation13], 0  ;;  %s1589_s21 = smov 0   ;;  %s1591_s22 = smov 0  }
   0x3   :  { %s1593_s23 = smov 0  }
   0x4 LB: > { %s1146_s24 = sadd.s32 4294967295, %s1542_s23   ;;  %s32_s25 = sadd.s32 1, %s1538_s22  ;;  %s1542_s23 = sphi %s1593_s23, %s20_s23   ;;  %s1538_s22 = sphi %s1591_s22, %s1730_s22   ;;  %s1534_s21 = sphi %s1589_s21, %s1729_s21  }
   0x5   : > { %p34_p0 = scmp.ge.s32.totalorder %s32_s25, 3  ;;  %p1147_p1 = scmp.ge.s32.totalorder %s1542_s23, 1 }
   0x6   : > { %p199_p2 = scmp.lt.s32.totalorder %s1542_s23, 4  ;;  %p1616_p4 = scmp.eq.s32.totalorder %s1146_s24, 0 }
   0x7   : > { %s1732_s25 = smov (%p34_p0, %s32_s25), 0  ;;  %s1544_s28 = smov [#allocation8]  }
   0x8   : > { %p1610_p3 = pnand %p1147_p1, %p199_p2  ;;  %s233_s29 = sshll.u32 %s1544_s28, 4  ;;  %s234_s29 = int_to_ptr.vmem [resolvable:$true] %s233_s29 }
   0x9   : > { %s1445_s30 = scalar_lea.vmem %s234_s29, 8192  ;;  %p1453_p11 = scmp.lt.s32.totalorder %s234_s29, %s234_s29 }
   0xa   : > { %p1267_p5 = pneg %p1610_p3  ;;  %p1446_p8 = scmp.ne.s32.totalorder %s234_s29, %s1445_s30 }
   0xb   : > { %p1454_p12 = scmp.lt.s32.totalorder %s1445_s30, %s1445_s30 }
   0xc   : > { %p1268_p6 = pnand %p1616_p4, %p1267_p5 }
   0xd   : > { %p1455_p13 = por %p1454_p12, %p1453_p11 }
   0xe   : > { %p1436_p7 = pneg %p1268_p6 }
  0x10   : > { %p1448_p9 = pnand %p1446_p8, %p1436_p7 }
  0x12   : > { %p1449_p10 = pneg %p1448_p9 }
  0x14   : > { %p1456_p0 = pnand %p1455_p13, %p1449_p10 }
  0x16   : > { %1459 = shalt.err (!%p1456_p0)
}
  0x17   : > { %s1545_s7 = smov 256   ;;  %s1546_s8 = smov 16  }
  0x18   : > { %1270 = dma.hbm_to_vmem [thread:$0]  (!%p1268_p6), %s1722_s3, 8192, %s234_s29, [#allocation9], %s1545_s7, %s1545_s7, %s1546_s8  }
  0x19   : > { %252 = sbr.rel (%p1610_p3) target bundleno = 1165 (0x48d), region = 40 }
  0x1e   : > { %1521 = dma.done.wait (%p1616_p4), [#allocation9], 8192  }
  0x1f   : > { %1523 = vsyncadd (%p1616_p4), [#allocation9], 4294959104  ;;  %p1154_p1 = scmp.ne.s32.totalorder %s1534_s21, 0 }
  0x21   : > { %305 = sbr.rel (%p1154_p1) target bundleno = 40 (0x28), region = 52 }
  0x26   : > { %vm307_vm0 = vcmask 254976   ;;  %v1547_v0 = vmov 0.0  }
  0x27   : > { %306 = vst [vmem:[#allocation4] sm:$0xf] %v1547_v0  ;;  %308 = vst.msk [vmem:[#allocation3] sm:$0x3] %vm307_vm0, %v1547_v0 }
  0x28 PF: > { %v1313_v1 = vld [vmem:[#allocation8 + $0xe4] ss:$16 sps:$4 sm:$0xff]   ;;  %v1315_v2 = vld [vmem:[#allocation8 + $0xe0] ss:$16 sps:$4 sm:$0xff]   ;;  %v1324_v6 = vld [vmem:[#allocation8 + $0xec] ss:$16 sps:$4 sm:$0xff]  }
  0x29   : > { %729 = vmatprep.subr.bf16.mxu0 %v1313_v1  ;;  %v1316_v3 = vld [vmem:[#allocation8 + $0xc4] ss:$16 sps:$4 sm:$0xff]   ;;  %v1318_v4 = vld [vmem:[#allocation8 + $0xc0] ss:$16 sps:$4 sm:$0xff]   ;;  %v1327_v7 = vld [vmem:[#allocation8 + $0xe8] ss:$16 sps:$4 sm:$0xff]   ;;  %770 = vmatprep.subr.bf16.mxu1 %v1324_v6 }
  0x2a   : > { %730 = vmatpush1.bf16.msra.mxu0 %v1315_v2  ;;  %v1319_v5 = vld [vmem:[#allocation8 + $0xa4] ss:$16 sps:$4 sm:$0xff]   ;;  %v1321_v8 = vld [vmem:[#allocation8 + $0xa0] ss:$16 sps:$4 sm:$0xff]   ;;  %771 = vmatpush1.bf16.msra.mxu1 %v1327_v7  ;;  %v1330_v10 = vld [vmem:[#allocation8 + $0xcc] ss:$16 sps:$4 sm:$0xff]  }
  0x2b   : > { %731 = vmatprep.subr.bf16.mxu0 %v1316_v3  ;;  %v1322_v9 = vld [vmem:[#allocation8 + $0x84] ss:$16 sps:$4 sm:$0xff]   ;;  %v1333_v11 = vld [vmem:[#allocation8 + $0xc8] ss:$16 sps:$4 sm:$0xff]   ;;  %772 = vmatprep.subr.bf16.mxu1 %v1330_v10  ;;  %v1326_v12 = vld [vmem:[#allocation8 + $0x80] ss:$16 sps:$4 sm:$0xff]  }
  0x2c   : > { %v1328_v13 = vld [vmem:[#allocation8 + $0x64] ss:$16 sps:$4 sm:$0xff]   ;;  %v1336_v14 = vld [vmem:[#allocation8 + $0xac] ss:$16 sps:$4 sm:$0xff]   ;;  %v1339_v15 = vld [vmem:[#allocation8 + $0xa8] ss:$16 sps:$4 sm:$0xff]  }
  0x2d   : > { %v1342_v16 = vld [vmem:[#allocation8 + $0x8c] ss:$16 sps:$4 sm:$0xff]   ;;  %v1332_v17 = vld [vmem:[#allocation8 + $0x60] ss:$16 sps:$4 sm:$0xff]   ;;  %v1334_v18 = vld [vmem:[#allocation8 + $0x44] ss:$16 sps:$4 sm:$0xff]  }
  0x2e   : > { %732 = vmatpush1.bf16.msra.mxu0 %v1318_v4  ;;  %773 = vmatpush1.bf16.msra.mxu1 %v1333_v11  ;;  %v1345_v19 = vld [vmem:[#allocation8 + $0x88] ss:$16 sps:$4 sm:$0xff]   ;;  %v1348_v20 = vld [vmem:[#allocation8 + $0x6c] ss:$16 sps:$4 sm:$0xff]   ;;  %v1338_v21 = vld [vmem:[#allocation8 + $0x40] ss:$16 sps:$4 sm:$0xff]  }
  0x2f   : > { %733 = vmatprep.subr.bf16.mxu0 %v1319_v5  ;;  %774 = vmatprep.subr.bf16.mxu1 %v1336_v14  ;;  %v1340_v22 = vld [vmem:[#allocation8 + $0x24] ss:$16 sps:$4 sm:$0xff]   ;;  %v1351_v23 = vld [vmem:[#allocation8 + $0x68] ss:$16 sps:$4 sm:$0xff]   ;;  %v1354_v24 = vld [vmem:[#allocation8 + $0x4c] ss:$16 sps:$4 sm:$0xff]  }
  0x30   : > { %v1344_v25 = vld [vmem:[#allocation8 + $0x20] ss:$16 sps:$4 sm:$0xff]   ;;  %v1346_v26 = vld [vmem:[#allocation8 + $0x4] ss:$16 sps:$4 sm:$0xff]   ;;  %v1357_v27 = vld [vmem:[#allocation8 + $0x48] ss:$16 sps:$4 sm:$0xff]  }
  0x31   : > { %v1360_v28 = vld [vmem:[#allocation8 + $0x2c] ss:$16 sps:$4 sm:$0xff]   ;;  %v1350_v29 = vld [vmem:[#allocation8] ss:$16 sps:$4 sm:$0xff]   ;;  %v1352_v30 = vld [vmem:[#allocation8 + $0x1e4] ss:$16 sps:$4 sm:$0xff]  }
  0x32   : > { %734 = vmatpush1.bf16.msra.mxu0 %v1321_v8  ;;  %775 = vmatpush1.bf16.msra.mxu1 %v1339_v15  ;;  %v1363_v31 = vld [vmem:[#allocation8 + $0x28] ss:$16 sps:$4 sm:$0xff]   ;;  %v1366_v32 = vld [vmem:[#allocation8 + $0xc] ss:$16 sps:$4 sm:$0xff]   ;;  %v1356_v33 = vld [vmem:[#allocation8 + $0x1e0] ss:$16 sps:$4 sm:$0xff]   ;;  %v389_v8 = vlaneseq }
  0x33   : > { %735 = vmatprep.subr.bf16.mxu0 %v1322_v9  ;;  %776 = vmatprep.subr.bf16.mxu1 %v1342_v16  ;;  %v1358_v34 = vld [vmem:[#allocation8 + $0x1c4] ss:$16 sps:$4 sm:$0xff]   ;;  %v1369_v35 = vld [vmem:[#allocation8 + $0x8] ss:$16 sps:$4 sm:$0xff]   ;;  %v1372_v36 = vld [vmem:[#allocation8 + $0x1ec] ss:$16 sps:$4 sm:$0xff]  }
  0x34   : > { %v1362_v37 = vld [vmem:[#allocation8 + $0x1c0] ss:$16 sps:$4 sm:$0xff]   ;;  %v1364_v38 = vld [vmem:[#allocation8 + $0x1a4] ss:$16 sps:$4 sm:$0xff]   ;;  %v1375_v39 = vld [vmem:[#allocation8 + $0x1e8] ss:$16 sps:$4 sm:$0xff]  }
  0x35   : > { %v1378_v40 = vld [vmem:[#allocation8 + $0x1cc] ss:$16 sps:$4 sm:$0xff]   ;;  %v1368_v41 = vld [vmem:[#allocation8 + $0x1a0] ss:$16 sps:$4 sm:$0xff]   ;;  %v1370_v43 = vld [vmem:[#allocation8 + $0x184] ss:$16 sps:$4 sm:$0xff]  }
  0x36   : > { %736 = vmatpush1.bf16.msra.mxu0 %v1326_v12  ;;  %777 = vmatpush1.bf16.msra.mxu1 %v1345_v19  ;;  %v1155_v42 = vld.sshfl [vmem:[#allocation4] sm:$0x33 pattern:$0x76325410]  ;;  %v1384_v46 = vld [vmem:[#allocation8 + $0x1ac] ss:$16 sps:$4 sm:$0xff]  }
  0x37   : > { %737 = vmatprep.subr.bf16.mxu0 %v1328_v13  ;;  %778 = vmatprep.subr.bf16.mxu1 %v1348_v20  ;;  %v1381_v44 = vld [vmem:[#allocation8 + $0x1c8] ss:$16 sps:$4 sm:$0xff]   ;;  %v318_v45 = vcombine.high %v1155_v42, %v1155_v42  ;;  %v1374_v47 = vld [vmem:[#allocation8 + $0x180] ss:$16 sps:$4 sm:$0xff]   ;;  %v1376_v48 = vld [vmem:[#allocation8 + $0x164] ss:$16 sps:$4 sm:$0xff]   ;;  %v321_v3 = vpack.c.bf16 %v1155_v42, %v1155_v42 }
  0x38   : > { %v1387_v50 = vld [vmem:[#allocation8 + $0x1a8] ss:$16 sps:$4 sm:$0xff]   ;;  %v1390_v51 = vld [vmem:[#allocation8 + $0x18c] ss:$16 sps:$4 sm:$0xff]   ;;  %v1380_v52 = vld [vmem:[#allocation8 + $0x160] ss:$16 sps:$4 sm:$0xff]  }
  0x39   : > { %v322_v49 = vpack.c.bf16 %v318_v45, %v318_v45  ;;  %v1382_v53 = vld [vmem:[#allocation8 + $0x144] ss:$16 sps:$4 sm:$0xff]   ;;  %v1393_v54 = vld [vmem:[#allocation8 + $0x188] ss:$16 sps:$4 sm:$0xff]   ;;  %v1396_v55 = vld [vmem:[#allocation8 + $0x16c] ss:$16 sps:$4 sm:$0xff]  }
  0x3a   : > { %738 = vmatpush1.bf16.msra.mxu0 %v1332_v17  ;;  %779 = vmatpush1.bf16.msra.mxu1 %v1351_v23  ;;  %v1386_v56 = vld [vmem:[#allocation8 + $0x140] ss:$16 sps:$4 sm:$0xff]   ;;  %v1388_v57 = vld [vmem:[#allocation8 + $0x124] ss:$16 sps:$4 sm:$0xff]   ;;  %v1399_v58 = vld [vmem:[#allocation8 + $0x168] ss:$16 sps:$4 sm:$0xff]  }
  0x3b   : > { %739 = vmatprep.subr.bf16.mxu0 %v1334_v18  ;;  %780 = vmatprep.subr.bf16.mxu1 %v1354_v24  ;;  %v1400_v59 = vld [vmem:[#allocation8 + $0x14c] ss:$16 sps:$4 sm:$0xff]   ;;  %v1392_v60 = vld [vmem:[#allocation8 + $0x120] ss:$16 sps:$4 sm:$0xff]   ;;  %v1394_v61 = vld [vmem:[#allocation8 + $0x104] ss:$16 sps:$4 sm:$0xff]  }
  0x3c   : > { %761 = vmatprep.mubr.bf16.mxu0 %v322_v49  ;;  %802 = vmatprep.mubr.bf16.mxu1 %v322_v49  ;;  %v1402_v62 = vld [vmem:[#allocation8 + $0x148] ss:$16 sps:$4 sm:$0xff]   ;;  %v1403_v63 = vld [vmem:[#allocation8 + $0x12c] ss:$16 sps:$4 sm:$0xff]   ;;  %v1398_v0 = vld [vmem:[#allocation8 + $0x100] ss:$16 sps:$4 sm:$0xff]  }
  0x3d   : > { %v1405_v1 = vld [vmem:[#allocation8 + $0x128] ss:$16 sps:$4 sm:$0xff]   ;;  %v1406_v2 = vld [vmem:[#allocation8 + $0x10c] ss:$16 sps:$4 sm:$0xff]   ;;  %vm836_vm1 = vcmask 254976   ;;  %v1548_v6 = vmov 0.0  }
  0x3e   : > { %740 = vmatpush1.bf16.msra.mxu0 %v1338_v21  ;;  %781 = vmatpush1.bf16.msra.mxu1 %v1357_v27  ;;  %v1408_v4 = vld [vmem:[#allocation8 + $0x108] ss:$16 sps:$4 sm:$0xff]   ;;  %842 = vst.msk [vmem:[#allocation7] sm:$0x3] %vm836_vm1, %v1548_v6  ;;  %vm1549_vm2 = vmmov 0   ;;  %v1647_v9 = vshrl.u32 %v389_v8, 7 }
  0x3f   : > { %741 = vmatprep.subr.bf16.mxu0 %v1340_v22  ;;  %782 = vmatprep.subr.bf16.mxu1 %v1360_v28  ;;  %v1409_v5 = vld [vmem:[%s1721_s2 + $0x8] sm:$0xff]   ;;  %v1410_v7 = vld [vmem:[%s1721_s2] sm:$0xff]   ;;  %vm861_vm3 = vcmask 261120   ;;  %vm839_vm4 = vcmask 1024   ;;  %vm915_vm6 = vcmask 123904   ;;  %vm956_vm7 = vcmask 130048  }
  0x40   : > { %v391_v10 = vsub.s32 0, %v1647_v9  ;;  %v387_v11 = vld [vmem:[%s1723_s4] sm:$0xf]  ;;  %v395_v12 = vsub.s32 1, %v1647_v9  ;;  %v403_v21 = vsub.s32 3, %v1647_v9  ;;  %p1229_p2 = scmp.ne.s32.totalorder %s1534_s21, 2 }
  0x41   : > { %841 = vst.msk [vmem:[#allocation6] sm:$0x3] %vm839_vm4, %v1548_v6 }
  0x42   : > { %742 = vmatpush1.bf16.msra.mxu0 %v1344_v25  ;;  %783 = vmatpush1.bf16.msra.mxu1 %v1363_v31  ;;  %v392_v13 = vrot.slane %v387_v11, %v391_v10  ;;  %v396_v14 = vrot.slane %v387_v11, %v395_v12  ;;  %v399_v25 = vsub.s32 2, %v1647_v9  ;;  %v404_v27 = vrot.slane %v387_v11, %v403_v21 }
  0x43   : > { %743 = vmatprep.subr.bf16.mxu0 %v1346_v26  ;;  %784 = vmatprep.subr.bf16.mxu1 %v1366_v32 }
  0x46   : > { %744 = vmatpush1.bf16.msra.mxu0 %v1350_v29  ;;  %785 = vmatpush1.bf16.msra.mxu1 %v1369_v35  ;;  %v400_v29 = vrot.slane %v387_v11, %v399_v25 }
  0x47   : > { %745 = vmatprep.subr.bf16.mxu0 %v1352_v30  ;;  %786 = vmatprep.subr.bf16.mxu1 %v1372_v36 }
  0x4a   : > { %746 = vmatpush2.bf16.msra.mxu0 %v1356_v33  ;;  %787 = vmatpush2.bf16.msra.mxu1 %v1375_v39 }
  0x4b   : > { %747 = vmatprep.subr.bf16.mxu0 %v1358_v34  ;;  %788 = vmatprep.subr.bf16.mxu1 %v1378_v40 }
  0x4e   : > { %748 = vmatpush2.bf16.msra.mxu0 %v1362_v37  ;;  %789 = vmatpush2.bf16.msra.mxu1 %v1381_v44 }
  0x4f   : > { %749 = vmatprep.subr.bf16.mxu0 %v1364_v38  ;;  %790 = vmatprep.subr.bf16.mxu1 %v1384_v46 }
  0x52   : > { %750 = vmatpush2.bf16.msra.mxu0 %v1368_v41  ;;  %791 = vmatpush2.bf16.msra.mxu1 %v1387_v50  ;;  %v830_v41 = vld [vmem:[#allocation3] sm:$0x3] }
  0x53   : > { %751 = vmatprep.subr.bf16.mxu0 %v1370_v43  ;;  %792 = vmatprep.subr.bf16.mxu1 %v1390_v51 }
  0x56   : > { %752 = vmatpush2.bf16.msra.mxu0 %v1374_v47  ;;  %793 = vmatpush2.bf16.msra.mxu1 %v1393_v54  ;;  %v1226_v54 = vld [vmem:[%s1719_s0] ss:$0 sm:$0xff] }
  0x57   : > { %753 = vmatprep.subr.bf16.mxu0 %v1376_v48  ;;  %794 = vmatprep.subr.bf16.mxu1 %v1396_v55  ;;  %vm912_vm5 = vcmp.eq.s32.totalorder %v1226_v54, %v1647_v9 }
  0x5a   : > { %754 = vmatpush2.bf16.msra.mxu0 %v1380_v52  ;;  %795 = vmatpush2.bf16.msra.mxu1 %v1399_v58 }
  0x5b   : > { %755 = vmatprep.subr.bf16.mxu0 %v1382_v53  ;;  %796 = vmatprep.subr.bf16.mxu1 %v1400_v59  ;;  %v1550_v53 = vmov -1e+30  }
  0x5c   : > { %840 = vst.msk [vmem:[#allocation5] sm:$0x3] %vm839_vm4, %v1550_v53 }
  0x5e   : > { %756 = vmatpush2.bf16.msra.mxu0 %v1386_v56  ;;  %797 = vmatpush2.bf16.msra.mxu1 %v1402_v62 }
  0x5f   : > { %757 = vmatprep.subr.bf16.mxu0 %v1388_v57  ;;  %798 = vmatprep.subr.bf16.mxu1 %v1403_v63 }
  0x62   : > { %758 = vmatpush2.bf16.msra.mxu0 %v1392_v60  ;;  %799 = vmatpush2.bf16.msra.mxu1 %v1405_v1 }
  0x63   : > { %759 = vmatprep.subr.bf16.mxu0 %v1394_v61  ;;  %800 = vmatprep.subr.bf16.mxu1 %v1406_v2  ;;  %v1551_v61 = vmov 0   ;;  %v914_v62 = vld [vmem:[#allocation5] sm:$0x3]  ;;  %v1411_v2 = vld [vmem:[%s1720_s1] sm:$0xff]  }
  0x64   : > { %1311 = vset.pattern.permute.xlu0 %v1551_v61  ;;  %1312 = vset.pattern.permute.xlu1 %v1551_v61 }
  0x66   : > { %760 = vmatpush2.bf16.msra.mxu0 %v1398_v0  ;;  %801 = vmatpush2.bf16.msra.mxu1 %v1408_v4 }
  0x67   : > { %1241 = vmatprep.subr.bf16.mxu0 %v1548_v6  ;;  %1249 = vmatprep.subr.bf16.mxu1 %v1548_v6 }
  0x69   : > { %762 = vmatmul.mubr.bf16.vlgmr.msra.gmra.mxu0 %v321_v3  ;;  %803 = vmatmul.mubr.bf16.vlgmr.msra.gmra.mxu1 %v321_v3 }
  0x6a   : > { %1242 = vmatpush3.bf16.msra.mxu0 %v1409_v5  ;;  %1245 = vmatprep.mubr.msk.bf16.mxu0 %vm1549_vm2, %v1548_v6 }
  0x6b   : > { %1243 = vmatprep.subr.bf16.mxu0 %v1548_v6  ;;  %1251 = vmatprep.mubr.msk.bf16.mxu1 %vm1549_vm2, %v1548_v6 }
  0x6c   : > { %1250 = vmatpush3.bf16.msra.mxu1 %v1411_v2 }
  0x6e   : > { %1244 = vmatpush3.bf16.msra.mxu0 %v1410_v7 }
 0x129   : > { %v763_v15 = vpop.f32.mrf.mxu0  ;;  %v804_v23 = vpop.f32.mrf.mxu1 }
 0x12a   : > { %v764_v16 = vadd.f32 %v763_v15, %v392_v13  ;;  %v805_v32 = vadd.f32 %v804_v23, %v400_v29  ;;  %v932_v13 = vld [vmem:[#allocation6] sm:$0x3] }
 0x12b   : > { %v765_v17 = vpop.f32.mrf.mxu0  ;;  %v806_v26 = vpop.f32.mrf.mxu1 }
 0x12c   : > { %v1220_v18 = vmul.f32 -1.442695, %v764_v16  ;;  %v766_v19 = vadd.f32 %v765_v17, %v396_v14  ;;  %v807_v31 = vadd.f32 %v806_v26, %v404_v27 }
 0x12d   : > { %v767_v20 = vpop.f32.mrf.mxu0  ;;  %v808_v28 = vpop.f32.mrf.mxu1 }
 0x12e   : > { %1412 = vpow2.f32 %v1220_v18  ;;  %v1221_v22 = vmul.f32 -1.442695, %v766_v19  ;;  %v1222_v33 = vmul.f32 -1.442695, %v807_v31  ;;  %v940_v19 = vld [vmem:[#allocation7] sm:$0x3] }
 0x12f   : > { %v768_v24 = vpop.f32.mrf.mxu0  ;;  %v809_v30 = vpop.f32.mrf.mxu1 }
 0x130   : > { %1414 = vpow2.f32 %v1221_v22 }
 0x131   : > { %1416 = vtanh.f32 %v805_v32 }
 0x132   : > { %1418 = vpow2.f32 %v1222_v33 }
 0x13b   : > { %v1413_v34 = vpop.eup %1412 }
 0x13c   : > { %v814_v35 = vadd.f32 1.0, %v1413_v34 }
 0x13d   : > { %v1415_v36 = vpop.eup %1414 }
 0x13e   : > { %1420 = vrcp.f32 %v814_v35  ;;  %v820_v37 = vadd.f32 1.0, %v1415_v36  ;;  %v1417_v38 = vpop.eup %1416 }
 0x13f   : > { %v1419_v39 = vpop.eup %1418 }
 0x140   : > { %1422 = vrcp.f32 %v820_v37  ;;  %v827_v43 = vadd.f32 1.0, %v1419_v39 }
 0x142   : > { %1424 = vrcp.f32 %v827_v43 }
 0x14b   : > { %v1421_v40 = vpop.eup %1420 }
 0x14c   : > { %v832_v45 = vmul.f32 %v1421_v40, %v1417_v38 }
 0x14d   : > { %v1423_v42 = vpop.eup %1422 }
 0x14e   : > { %v831_v44 = vmul.f32 %v1423_v42, %v830_v41 }
 0x14f   : > { %v1425_v47 = vpop.eup %1424 }
 0x150   : > { %v833_v46 = vadd.f32 %v832_v45, %v831_v44 }
 0x152   : > { %1426 = vtanh.f32 %v833_v46  ;;  %837 = vst.msk [vmem:[#allocation3] sm:$0x3] %vm836_vm1, %v833_v46 }
 0x15f   : > { %v1427_v48 = vpop.eup %1426 }
 0x160   : > { %v835_v49 = vmul.f32 %v1427_v48, %v1425_v47 }
 0x162   : > { %838 = vst.msk [vmem:[#allocation2] sm:$0x3] %vm836_vm1, %v835_v49 }
 0x169   : > { %v1017_v50 = vld [vmem:[#allocation2] sm:$0x3] }
 0x16a   : > { %v843_v51 = vld [vmem:[#allocation2] sm:$0x3]  ;;  %1018 = vst.msk [vmem:[#allocation4] sm:$0x3] %vm836_vm1, %v1017_v50 }
 0x16b   : > { %v844_v52 = vpack.c.bf16 %v843_v51, %v843_v51 }
 0x16d   : > { %1246 = vmatmul.mubr.msk.bf16.vlgmr.msra.gmra.mxu0 %vm861_vm3, %v844_v52 }
 0x22d   : > { %v899_v55 = vpop.f32.mrf.mxu0 }
 0x22e   : > { %v913_v56 = vsel %vm912_vm5, %v899_v55, -1e+30 }
 0x22f   : > { %v1247_v57 = vpop.f32.mrf.mxu0  ;;  %v916_v58 = vsel %vm915_vm6, %v913_v56, -inf }
 0x230   : > { %917 = vmax.xlane.f32.xlu0 %v916_v58 }
 0x231   : > { %v902_v59 = vpop.f32.mrf.mxu0 }
 0x233   : > { %v1248_v60 = vpop.f32.mrf.mxu0 }
 0x2b9   : > { %v918_v63 = vpop.xlane.xlu0 %917 }
 0x2ba   : > { %v919_v0 = vmax.f32 %v914_v62, %v918_v63 }
 0x2bc   : > { %v920_v1 = vsub.f32 %v914_v62, %v919_v0  ;;  %1003 = vst.msk [vmem:[#allocation5] sm:$0x3] %vm839_vm4, %v919_v0  ;;  %925 = vperm.xlu0 %1311, %v919_v0  }
 0x2be   : > { %v921_v8 = vmul.f32 1.442695, %v920_v1 }
 0x337   : > { %v926_v3 = vpop.permute.xlu0 %925 }
 0x338   : > { %v928_v4 = vsub.f32 %v899_v55, %v926_v3 }
 0x33a   : > { %v929_v5 = vmul.f32 1.442695, %v928_v4 }
 0x33c   : > { %1428 = vpow2.f32 %v929_v5 }
 0x33d   : > { %1430 = vpow2.f32 %v921_v8 }
 0x349   : > { %v1429_v6 = vpop.eup %1428 }
 0x34a   : > { %v931_v7 = vsel %vm912_vm5, %v1429_v6, 0.0  ;;  %v1431_v12 = vpop.eup %1430 }
 0x34b   : > { %v934_v10 = vsel %vm915_vm6, %v931_v7, 0.0  ;;  %v947_v11 = vpack.c.bf16 %v931_v7, %v931_v7  ;;  %v933_v14 = vmul.f32 %v1431_v12, %v932_v13 }
 0x34c   : > { %935 = vadd.xlane.f32.xlu1 %v934_v10 }
 0x34d   : > { %1252 = vmatmul.mubr.msk.bf16.vlgmr.msra.gmra.mxu1 %vm956_vm7, %v947_v11 }
 0x35d   : > { %943 = vperm.xlu1 %1312, %v1431_v12  }
 0x3d5   : > { %v936_v15 = vpop.xlane.xlu1 %935 }
 0x3d6   : > { %v937_v16 = vadd.f32 %v936_v15, %v933_v14 }
 0x3d8   : > { %939 = vst.msk [vmem:[#allocation6] sm:$0x3] %vm839_vm4, %v937_v16 }
 0x3d9   : > { %v944_v20 = vpop.permute.xlu1 %943 }
 0x3da   : > { %v946_v21 = vmul.f32 %v944_v20, %v940_v19 }
 0x3df   : > { %v1008_v17 = vld [vmem:[#allocation6] sm:$0x3] }
 0x3e0   : > { %v1009_v18 = vadd.f32 1e-10, %v1008_v17 }
 0x3e2   : > { %1432 = vrcp.f32 %v1009_v18 }
 0x3ef   : > { %v1433_v9 = vpop.eup %1432 }
 0x3f0   : > { %1013 = vperm.xlu1 %1312, %v1433_v9  }
 0x40d   : > { %v994_v22 = vpop.f32.mrf.mxu1 }
 0x40e   : > { %v1000_v23 = vadd.f32 %v994_v22, %v946_v21 }
 0x40f   : > { %v1253_v24 = vpop.f32.mrf.mxu1 }
 0x410   : > { %1002 = vst.msk [vmem:[#allocation7] sm:$0x3] %vm836_vm1, %v1000_v23 }
 0x411   : > { %v997_v25 = vpop.f32.mrf.mxu1 }
 0x413   : > { %v1254_v26 = vpop.f32.mrf.mxu1 }
 0x417   : > { %v1007_v27 = vld [vmem:[#allocation7] sm:$0x3] }
 0x46a   : > { %1023 = sbr.rel (%p1229_p2) target bundleno = 1137 (0x471), region = 60 }
 0x46b   : > { %v1014_v28 = vpop.permute.xlu1 %1013 }
 0x46c   : > { %v1016_v29 = vmul.f32 %v1014_v28, %v1007_v27 }
 0x46e   : > { %1019 = vst.msk [vmem:[#allocation4 + $0x2] sm:$0x3] %vm836_vm1, %v1016_v29 }
 0x46f   : > { %v1024_v30 = vld [vmem:[#allocation2] sm:$0x3]  ;;  %1026 = vst.msk [vmem:[#allocation12] sm:$0x3] %vm836_vm1, %v1016_v29 }
 0x470   : > { %1025 = vst.msk [vmem:[#allocation11] sm:$0x3] %vm836_vm1, %v1024_v30 }
 0x471 PF: > { %p1684_p3 = scmp.eq.s32.totalorder %s1146_s24, 2  ;;  %s1552_s27 = smov [#allocation11]  }
 0x472   : > { %s1034_s28 = sshll.u32 %s1552_s27, 4  ;;  %s1553_s29 = smov [#allocation12]   ;;  %s1035_s28 = int_to_ptr.vmem [resolvable:$true] %s1034_s28 }
 0x473   : > { %s1045_s30 = sshll.u32 %s1553_s29, 4  ;;  %s1460_s21 = scalar_lea.vmem %s1035_s28, 32  ;;  %s1046_s30 = int_to_ptr.vmem [resolvable:$true] %s1045_s30 }
 0x474   : > { %p1461_p4 = scmp.ne.s32.totalorder %s1035_s28, %s1460_s21  ;;  %p1467_p7 = scmp.lt.s32.totalorder %s1035_s28, %s1035_s28 }
 0x475   : > { %p1468_p8 = scmp.lt.s32.totalorder %s1460_s21, %s1460_s21 }
 0x476   : > { %p1462_p5 = pnand %p1461_p4, %p1684_p3 }
 0x477   : > { %p1469_p9 = por %p1468_p8, %p1467_p7 }
 0x478   : > { %p1463_p6 = pneg %p1462_p5 }
 0x47a   : > { %p1470_p10 = pnand %p1469_p9, %p1463_p6 }
 0x47c   : > { %1473 = shalt.err (!%p1470_p10)
}
 0x47d   : > { %1260 = dma.vmem_to_hbm [thread:$0]  (%p1684_p3), %s1035_s28, 32, %s1724_s5, [#allocation10]  }
 0x47e   : > { %s1484_s8 = scalar_lea.vmem %s1046_s30, 32  ;;  %p1491_p0 = scmp.lt.s32.totalorder %s1046_s30, %s1046_s30 }
 0x47f   : > { %p1485_p11 = scmp.ne.s32.totalorder %s1046_s30, %s1484_s8  ;;  %p1492_p1 = scmp.lt.s32.totalorder %s1484_s8, %s1484_s8 }
 0x481   : > { %p1486_p12 = pnand %p1485_p11, %p1684_p3  ;;  %p1493_p2 = por %p1492_p1, %p1491_p0 }
 0x483   : > { %p1487_p13 = pneg %p1486_p12 }
 0x485   : > { %p1494_p4 = pnand %p1493_p2, %p1487_p13 }
 0x487   : > { %1497 = shalt.err (!%p1494_p4)
}
 0x488   : > { %1262 = dma.vmem_to_hbm [thread:$0]  (%p1684_p3), %s1046_s30, 32, %s1725_s6, [#allocation13]  }
 0x489   : > { %1525 = dma.done.wait (%p1684_p3), [#allocation10], 32  }
 0x48a   : > { %1527 = vsyncadd (%p1684_p3), [#allocation10], 4294967264 }
 0x48b   : > { %1529 = dma.done.wait (%p1684_p3), [#allocation13], 32  }
 0x48c   : > { %1531 = vsyncadd (%p1684_p3), [#allocation13], 4294967264 }
 0x48d PF: > { %s20_s23 = sadd.s32 1, %s1542_s23   ;;  %s1729_s21 = smov %s1538_s22 }
 0x48e   : > { %p17_p5 = scmp.ge.s32.totalorder %s20_s23, 5   ;;  %s1730_s22 = smov %s1732_s25 }
 0x490   :  { %19 = sbr.rel (!%p17_p5) target bundleno = 4 (0x4), region = 102 }
 0x495   :  { %1062 = vsyncpa [#allocation9], 1 }
 0x496   :  { %1064 = vsyncpa [#allocation9 + $0x1], 1 }
 0x497   :  { %1065 = vsyncpa [#allocation10], 1 }
 0x498   :  { %1067 = vsyncpa [#allocation10 + $0x1], 1 }
 0x499   :  { %1068 = vsyncpa [#allocation13], 1 }

</bundles_post_ra>
